<compile_context>
chip_gen: v7x
topology: tpu7x:2x2x1
jax: 0.10.0
libtpu: 0.0.40
codegen_flags: <defaults>
</compile_context>

<pallas_src>
import functools

import jax
import jax.numpy as jnp
from jax import lax
from jax.experimental import pallas as pl
from jax.experimental.pallas import tpu as pltpu

SQRT2 = 1.4142135623730951
LN_EPS = 1e-5
MXU_DTYPE = jnp.bfloat16          # matmul operand dtype (f32 accumulation)
VMEM_BUDGET = 32 * 1024 * 1024    # conservative across v5e/v6e (128 MiB) and v7x (64 MiB)
MAX_TILE_ROWS = 512               # 256-512 recommended on v7x; up to 1024 fits v5e/v6e


def _gelu(x):
    # exact (erf-based) GELU, matching torch.nn.GELU() default
    return 0.5 * x * (1.0 + lax.erf(x / SQRT2))


def _layernorm(x, g, b):
    mu = jnp.mean(x, axis=-1, keepdims=True)
    var = jnp.mean(jnp.square(x - mu), axis=-1, keepdims=True)
    return (x - mu) * lax.rsqrt(var + LN_EPS) * g + b


def _round_up(x, m):
    return (x + m - 1) // m * m


def _tile_rows(m, *, io_cols, resident_bytes, max_rows=MAX_TILE_ROWS):
    """Pick a row-tile (multiple of 8) that fits the VMEM budget.

    io_cols ~ f32 columns live per row (double-buffered in/out tiles plus
    in-kernel intermediates).  resident_bytes ~ weights kept in VMEM across
    all grid steps.  Returns (tile_rows, padded_rows)."""
    avail = max(VMEM_BUDGET - resident_bytes, 1 << 20)
    tm = max(8, min(max_rows, avail // (8 * max(io_cols, 1))))
    tm = min(_round_up(tm, 8), _round_up(m, 8))
    mp = _round_up(m, tm)
    return tm, mp


def _params(n_parallel_axes, vmem_bytes=VMEM_BUDGET):
    return pltpu.CompilerParams(
        dimension_semantics=("parallel",) * n_parallel_axes,
        vmem_limit_bytes=int(vmem_bytes))


# ----------------------------- Pallas kernels -----------------------------

def _linear_kernel(x_ref, w_ref, b_ref, o_ref):
    x = x_ref[...].astype(w_ref.dtype)                 # bf16 MXU operands
    o_ref[...] = (jnp.dot(x, w_ref[...], preferred_element_type=jnp.float32)
                  + b_ref[...])


def pallas_linear(x, w, b):
    """y = x @ w + b, row-tiled with VMEM-resident weights."""
    M, K = x.shape
    N = w.shape[1]
    tm, Mp = _tile_rows(M, io_cols=2 * (K + N), resident_bytes=2 * K * N + 4 * N)
    xp = jnp.pad(x, ((0, Mp - M), (0, 0))) if Mp != M else x
    out = pl.pallas_call(
        _linear_kernel,
        out_shape=jax.ShapeDtypeStruct((Mp, N), jnp.float32),
        grid=(Mp // tm,),
        in_specs=[pl.BlockSpec((tm, K), lambda i: (i, 0)),
                  pl.BlockSpec((K, N), lambda i: (0, 0)),
                  pl.BlockSpec((1, N), lambda i: (0, 0))],
        out_specs=pl.BlockSpec((tm, N), lambda i: (i, 0)),
        compiler_params=_params(1),
    )(xp, w.astype(MXU_DTYPE), b.reshape(1, N))
    return out[:M] if Mp != M else out


def _ln_mlp_kernel(x_ref, g_ref, bln_ref, w1_ref, b1_ref, w2_ref, b2_ref,
                   o_ref, *, add_residual):
    # Fused: LayerNorm -> Linear -> GELU -> Linear (-> + residual)
    x = x_ref[...]
    xn = _layernorm(x, g_ref[...], bln_ref[...]).astype(w1_ref.dtype)
    h = (jnp.dot(xn, w1_ref[...], preferred_element_type=jnp.float32)
         + b1_ref[...])
    h = _gelu(h).astype(w2_ref.dtype)
    y = (jnp.dot(h, w2_ref[...], preferred_element_type=jnp.float32)
         + b2_ref[...])
    if add_residual:
        y = y + x
    o_ref[...] = y


def pallas_ln_mlp(x, g, bln, w1, b1, w2, b2, *, add_residual):
    M, D = x.shape
    H = w1.shape[1]
    N = w2.shape[1]
    resident = 2 * (D * H + H * N) + 4 * (2 * D + H + N)      # bf16 weights + f32 vecs
    tm, Mp = _tile_rows(M, io_cols=2 * (D + N) + 2 * H, resident_bytes=resident)
    xp = jnp.pad(x, ((0, Mp - M), (0, 0))) if Mp != M else x
    kern = functools.partial(_ln_mlp_kernel, add_residual=add_residual)
    out = pl.pallas_call(
        kern,
        out_shape=jax.ShapeDtypeStruct((Mp, N), jnp.float32),
        grid=(Mp // tm,),
        in_specs=[pl.BlockSpec((tm, D), lambda i: (i, 0)),
                  pl.BlockSpec((1, D), lambda i: (0, 0)),
                  pl.BlockSpec((1, D), lambda i: (0, 0)),
                  pl.BlockSpec((D, H), lambda i: (0, 0)),
                  pl.BlockSpec((1, H), lambda i: (0, 0)),
                  pl.BlockSpec((H, N), lambda i: (0, 0)),
                  pl.BlockSpec((1, N), lambda i: (0, 0))],
        out_specs=pl.BlockSpec((tm, N), lambda i: (i, 0)),
        compiler_params=_params(1),
    )(xp, g.reshape(1, D), bln.reshape(1, D),
      w1.astype(MXU_DTYPE), b1.reshape(1, H),
      w2.astype(MXU_DTYPE), b2.reshape(1, N))
    return out[:M] if Mp != M else out


def _attn_block_kernel(x_ref, g_ref, bln_ref, wqkv_ref, wo_ref, bo_ref, o_ref,
                       *, heads, scale):
    # Fused: LayerNorm -> fused QKV projection -> per-head softmax(QK^T)V ->
    #        single output projection -> + residual.
    # x_ref: (N, D) -- the leading batch axis is squeezed out by the BlockSpec.
    x = x_ref[...]
    d = x.shape[-1]
    dh = d // heads

    xn = _layernorm(x, g_ref[...], bln_ref[...]).astype(wqkv_ref.dtype)
    qkv = jnp.dot(xn, wqkv_ref[...], preferred_element_type=jnp.float32)  # (N, 3D)
    q = qkv[:, :d] * scale          # fold scale into q (N x D, not N x N)
    k = qkv[:, d:2 * d]
    v = qkv[:, 2 * d:]

    contract_last = (((1,), (1,)), ((), ()))     # q @ k^T without explicit transpose
    outs = []
    for h in range(heads):                       # heads static -> unrolled
        sl = slice(h * dh, (h + 1) * dh)
        s = lax.dot_general(q[:, sl].astype(MXU_DTYPE),
                            k[:, sl].astype(MXU_DTYPE),
                            contract_last,
                            preferred_element_type=jnp.float32)          # (N, N)
        s = s - jnp.max(s, axis=-1, keepdims=True)
        e = jnp.exp(s)
        p = e * pl.reciprocal(jnp.sum(e, axis=-1, keepdims=True), approx=True)
        outs.append(jnp.dot(p.astype(MXU_DTYPE), v[:, sl].astype(MXU_DTYPE),
                            preferred_element_type=jnp.float32))          # (N, dh)

    out = jnp.concatenate(outs, axis=-1).astype(wo_ref.dtype)             # (N, D)
    y = (jnp.dot(out, wo_ref[...], preferred_element_type=jnp.float32)
         + bo_ref[...])
    o_ref[...] = y + x                                                    # residual


def pallas_attn_block(x, g, bln, wqkv, wo, bo, *, heads, scale):
    B, N, D = x.shape
    kern = functools.partial(_attn_block_kernel, heads=heads, scale=scale)
    return pl.pallas_call(
        kern,
        out_shape=jax.ShapeDtypeStruct((B, N, D), jnp.float32),
        grid=(B,),
        in_specs=[pl.BlockSpec((pl.Squeezed(), N, D), lambda b: (b, 0, 0)),
                  pl.BlockSpec((1, D), lambda b: (0, 0)),
                  pl.BlockSpec((1, D), lambda b: (0, 0)),
                  pl.BlockSpec((D, 3 * D), lambda b: (0, 0)),
                  pl.BlockSpec((D, D), lambda b: (0, 0)),
                  pl.BlockSpec((1, D), lambda b: (0, 0))],
        out_specs=pl.BlockSpec((pl.Squeezed(), N, D), lambda b: (b, 0, 0)),
        compiler_params=_params(1),
    )(x, g.reshape(1, D), bln.reshape(1, D),
      wqkv.astype(MXU_DTYPE), wo.astype(MXU_DTYPE), bo.reshape(1, D))


# --------------------------- pure-JAX reference ----------------------------

HP = jax.lax.Precision.HIGHEST


def ref_linear(x, w, b):
    return jnp.dot(x, w, precision=HP) + b


def ref_ln_mlp(x, g, bln, w1, b1, w2, b2, *, add_residual):
    xn = _layernorm(x, g, bln)
    h = _gelu(jnp.dot(xn, w1, precision=HP) + b1)
    y = jnp.dot(h, w2, precision=HP) + b2
    return y + x if add_residual else y


def ref_attn_block(x, g, bln, wqkv, wo, bo, *, heads, scale):
    B, N, D = x.shape
    dh = D // heads
    xn = _layernorm(x, g, bln)
    qkv = jnp.einsum('bnd,de->bne', xn, wqkv, precision=HP)
    q, k, v = qkv[..., :D], qkv[..., D:2 * D], qkv[..., 2 * D:]
    q = q.reshape(B, N, heads, dh).transpose(0, 2, 1, 3)
    k = k.reshape(B, N, heads, dh).transpose(0, 2, 1, 3)
    v = v.reshape(B, N, heads, dh).transpose(0, 2, 1, 3)
    dots = jnp.einsum('bhid,bhjd->bhij', q, k, precision=HP) * scale
    attn = jax.nn.softmax(dots, axis=-1)
    out = jnp.einsum('bhij,bhjd->bhid', attn, v, precision=HP)
    out = out.transpose(0, 2, 1, 3).reshape(B, N, D)
    return jnp.einsum('bnd,de->bne', out, wo, precision=HP) + bo + x


PALLAS_OPS = dict(linear=pallas_linear, ln_mlp=pallas_ln_mlp,
                  attn_block=pallas_attn_block)
REF_OPS = dict(linear=ref_linear, ln_mlp=ref_ln_mlp, attn_block=ref_attn_block)


# ------------------------------ ViT forward -------------------------------

def vit_forward(params, image, cfg, ops):
    B, C, H, W = image.shape
    p = cfg['patch_size']
    dim = cfg['dim']
    heads = cfg['heads']
    hg, wg = H // p, W // p
    n = hg * wg

    # image_to_patch: 'b c (h p1) (w p2) -> b (h w) (p1 p2 c)'
    x = image.reshape(B, C, hg, p, wg, p)
    x = x.transpose(0, 2, 4, 3, 5, 1).reshape(B, n, p * p * C)

    # patch_to_embedding (Pallas row-tiled matmul)
    x = ops['linear'](x.reshape(B * n, -1), params['patch_w'],
                      params['patch_b']).reshape(B, n, dim)

    cls = jnp.broadcast_to(params['cls_token'], (B, 1, dim))
    x = jnp.concatenate([cls, x], axis=1)
    x = x + params['pos_emb'][:, :n + 1]
    # emb dropout: identity (rate 0.0)

    scale = float(dim) ** -0.5
    for layer in params['layers']:
        N = x.shape[1]
        # fused LN1 + MHA + out-proj + residual
        x = ops['attn_block'](x, layer['ln1_g'], layer['ln1_b'],
                              layer['wqkv'], layer['wo'], layer['bo'],
                              heads=heads, scale=scale)
        # fused LN2 + MLP + residual
        x = ops['ln_mlp'](x.reshape(B * N, dim), layer['ln2_g'], layer['ln2_b'],
                          layer['ff_w1'], layer['ff_b1'],
                          layer['ff_w2'], layer['ff_b2'],
                          add_residual=True).reshape(B, N, dim)

    cls_out = x[:, 0]                                  # to_class_token (Identity)
    # mlp_head: fused LayerNorm + Linear + GELU + Linear (num_classes is narrow;
    # masked store accepted on this tiny head — pad to 128 lanes for big configs).
    return ops['ln_mlp'](cls_out, params['head_ln_g'], params['head_ln_b'],
                         params['head_w1'], params['head_b1'],
                         params['head_w2'], params['head_b2'],
                         add_residual=False)


# ------------------------------ parameters ---------------------------------

def init_params(key, *, image_size, patch_size, num_classes, dim, depth, heads,
                mlp_dim, channels):
    num_patches = (image_size // patch_size) ** 2
    assert image_size % patch_size == 0
    assert num_patches >= 16  # MIN_NUM_PATCHES
    assert dim % heads == 0
    patch_dim = channels * patch_size ** 2

    keys = iter(jax.random.split(key, 8 + 8 * depth))

    def nrm(shape, s=0.02):
        return s * jax.random.normal(next(keys), shape, jnp.float32)

    params = {
        'pos_emb': jax.random.normal(next(keys), (1, num_patches + 1, dim), jnp.float32),
        'cls_token': jax.random.normal(next(keys), (1, 1, dim), jnp.float32),
        'patch_w': nrm((patch_dim, dim)),
        'patch_b': jnp.zeros((dim,), jnp.float32),
        'layers': [],
    }
    for _ in range(depth):
        params['layers'].append({
            'ln1_g': jnp.ones((dim,), jnp.float32),
            'ln1_b': jnp.zeros((dim,), jnp.float32),
            # to_qkv: Linear(dim, 3*dim, bias=False), stored (in, out);
            # columns [0:D]=q, [D:2D]=k, [2D:3D]=v; head h owns cols h*dh:(h+1)*dh.
            'wqkv': nrm((dim, 3 * dim)),
            'wo': nrm((dim, dim)),
            'bo': jnp.zeros((dim,), jnp.float32),
            'ln2_g': jnp.ones((dim,), jnp.float32),
            'ln2_b': jnp.zeros((dim,), jnp.float32),
            'ff_w1': nrm((dim, mlp_dim)),
            'ff_b1': jnp.zeros((mlp_dim,), jnp.float32),
            'ff_w2': nrm((mlp_dim, dim)),
            'ff_b2': jnp.zeros((dim,), jnp.float32),
        })
    params['head_ln_g'] = jnp.ones((dim,), jnp.float32)
    params['head_ln_b'] = jnp.zeros((dim,), jnp.float32)
    params['head_w1'] = nrm((dim, mlp_dim))
    params['head_b1'] = jnp.zeros((mlp_dim,), jnp.float32)
    params['head_w2'] = nrm((mlp_dim, num_classes))
    params['head_b2'] = jnp.zeros((num_classes,), jnp.float32)
    return params


if __name__ == "__main__":
    cfg = dict(image_size=16, patch_size=4, num_classes=10, dim=32, depth=2,
               heads=4, mlp_dim=64, channels=3)
    key = jax.random.PRNGKey(0)
    pkey, ikey = jax.random.split(key)
    params = init_params(pkey, **cfg)
    image = jax.random.normal(
        ikey, (2, cfg['channels'], cfg['image_size'], cfg['image_size']),
        jnp.float32)

    out = vit_forward(params, image, cfg, PALLAS_OPS)
    jax.block_until_ready(out)
    assert out.shape == (2, cfg['num_classes'])

    ref = vit_forward(params, image, cfg, REF_OPS)
    # Tolerance relaxed vs the f32 HIGHEST reference because the kernels use
    # bf16 MXU operands (f32 accumulation) and an approx EUP reciprocal.
    if not jnp.allclose(out, ref, atol=5e-3, rtol=5e-3):
        raise AssertionError(f"mismatch vs reference: max abs diff "
                             f"{float(jnp.max(jnp.abs(out - ref)))}")
    print("KERNEL_OK")
</pallas_src>

<mosaic_0001>
module attributes {stable_mosaic.version = 11 : i64} {
  func.func @_linear_kernel(%arg0: i32, %arg1: memref<32x48xf32, #tpu.memory_space<vmem>>, %arg2: memref<48x32xbf16, #tpu.memory_space<vmem>>, %arg3: memref<1x32xf32, #tpu.memory_space<vmem>>, %arg4: memref<32x32xf32, #tpu.memory_space<vmem>>) attributes {dimension_semantics = [#tpu.dimension_semantics<parallel>], iteration_bounds = array<i64: 1>, scalar_prefetch = 0 : i64, scratch_operands = 0 : i64, tpu.core_type = #tpu.core_type<tc>, window_params = [{transform_indices = @transform_0, window_bounds = array<i64: 32, 48>}, {pipeline_mode = #tpu.pipeline_mode<synchronous>, transform_indices = @transform_1, window_bounds = array<i64: 48, 32>}, {pipeline_mode = #tpu.pipeline_mode<synchronous>, transform_indices = @transform_2, window_bounds = array<i64: 1, 32>}, {transform_indices = @transform_3, window_bounds = array<i64: 32, 32>}]} {
    %c0 = arith.constant 0 : index
    %c0_0 = arith.constant 0 : index
    %0 = vector.load %arg1[%c0, %c0_0] : memref<32x48xf32, #tpu.memory_space<vmem>>, vector<32x48xf32>
    %1 = arith.truncf %0 : vector<32x48xf32> to vector<32x48xbf16>
    %c0_1 = arith.constant 0 : index
    %c0_2 = arith.constant 0 : index
    %2 = vector.load %arg2[%c0_1, %c0_2] : memref<48x32xbf16, #tpu.memory_space<vmem>>, vector<48x32xbf16>
    %cst = arith.constant dense<0.000000e+00> : vector<32x32xf32>
    %3 = tpu.matmul %1, %2, %cst {dimension_numbers = #tpu.dot_dimension_numbers<[1], [0], [0], [1], [0, 0, 1, 1], [], []>} : vector<32x48xbf16>, vector<48x32xbf16>, vector<32x32xf32> -> vector<32x32xf32>
    %c0_3 = arith.constant 0 : index
    %c0_4 = arith.constant 0 : index
    %4 = vector.load %arg3[%c0_3, %c0_4] : memref<1x32xf32, #tpu.memory_space<vmem>>, vector<1x32xf32>
    %5 = vector.broadcast %4 : vector<1x32xf32> to vector<32x32xf32>
    %6 = arith.addf %3, %5 : vector<32x32xf32>
    %c0_5 = arith.constant 0 : index
    %c0_6 = arith.constant 0 : index
    %7 = vector.load %arg4[%c0_5, %c0_6] : memref<32x32xf32, #tpu.memory_space<vmem>>, vector<32x32xf32>
    tpu.vector_store %arg4[%c0_5, %c0_6], %6 {strides = array<i32>} : memref<32x32xf32, #tpu.memory_space<vmem>>, vector<32x32xf32>,
    return
  }
  func.func @transform_0(%arg0: i32) -> (i32, i32) {
    %c0_i32 = arith.constant 0 : i32
    %c0_i32_0 = arith.constant 0 : i32
    return %arg0, %c0_i32 : i32, i32
  }
  func.func @transform_1(%arg0: i32) -> (i32, i32) {
    %c0_i32 = arith.constant 0 : i32
    %c0_i32_0 = arith.constant 0 : i32
    %c0_i32_1 = arith.constant 0 : i32
    return %c0_i32, %c0_i32_0 : i32, i32
  }
  func.func @transform_2(%arg0: i32) -> (i32, i32) {
    %c0_i32 = arith.constant 0 : i32
    %c0_i32_0 = arith.constant 0 : i32
    %c0_i32_1 = arith.constant 0 : i32
    return %c0_i32, %c0_i32_0 : i32, i32
  }
  func.func @transform_3(%arg0: i32) -> (i32, i32) {
    %c0_i32 = arith.constant 0 : i32
    %c0_i32_0 = arith.constant 0 : i32
    return %arg0, %c0_i32 : i32, i32
  }
}

</mosaic_0001>

<bundles_post_ra>
// kernel: tpu_custom_call.1
= control target key start
LH: loop header
LB: loop body
LE: loop exit
PB: predicated region body
PF: predicated region fallthrough
CT: control target
= control target key end

     0   :  { %vm53_vm0 = vcmask 392192   ;;  %s240_s0 = inlined_call_operand.vmem [shape: f32[32,48], index: 0, kind: input, shape index: {}]   ;;  %s241_s1 = inlined_call_operand.vmem [shape: bf16[48,32], index: 1, kind: input, shape index: {}]   ;;  %s242_s2 = inlined_call_operand.vmem [shape: f32[1,32], index: 2, kind: input, shape index: {}]   ;;  %s243_s3 = inlined_call_operand.hbm [shape: f32[32,32], index: 3, kind: output, shape index: {}]  }
   0x1   :  { %v154_v0 = vld [vmem:[%s241_s1] sm:$0xff]   ;;  %v155_v1 = vld [vmem:[%s241_s1 + $0x8] sm:$0xff]   ;;  %v156_v4 = vld [vmem:[%s241_s1 + $0x10] sm:$0xff]  }
   0x2   :  { %141 = vmatprep.subr.bf16.mxu0 %v154_v0  ;;  %v16_v2 = vld [vmem:[%s240_s0] sm:$0xff]  ;;  %v17_v3 = vld [vmem:[%s240_s0 + $0x8] sm:$0xff] }
   0x3   :  { %142 = vmatpush3.bf16.msra.mxu0 %v154_v0  ;;  %v20_v5 = vpack.c.bf16 %v17_v3, %v16_v2 }
   0x4   :  { %143 = vmatprep.subr.bf16.mxu0 %v155_v1 }
   0x5   :  { %8 = vsyncpa [#allocation3], 0  ;;  %147 = vmatprep.mubr.msk.bf16.mxu0 %vm53_vm0, %v20_v5  ;;  %v18_v6 = vld [vmem:[%s240_s0 + $0x10] sm:$0xff]  ;;  %v19_v7 = vld [vmem:[%s240_s0 + $0x18] sm:$0xff]  ;;  %vm109_vm1 = vcmask 261120   ;;  %s181_s1 = smov [#allocation2]  }
   0x6   :  { %v21_v8 = vpack.c.bf16 %v19_v7, %v18_v6  ;;  %v130_v9 = vld [vmem:[%s242_s2] ss:$0 sm:$0xff]  ;;  %s119_s28 = sshll.u32 %s181_s1, 4  ;;  %s120_s28 = int_to_ptr.vmem [resolvable:$true] %s119_s28 }
   0x7   :  { %144 = vmatpush3.bf16.msra.mxu0 %v155_v1  ;;  %s157_s0 = scalar_lea.vmem %s120_s28, 512  ;;  %p162_p1 = scmp.lt.s32.totalorder %s120_s28, %s120_s28 }
   0x8   :  { %145 = vmatprep.subr.bf16.mxu0 %v156_v4  ;;  %p158_p0 = scmp.ne.s32.totalorder %s120_s28, %s157_s0  ;;  %p163_p2 = scmp.lt.s32.totalorder %s157_s0, %s157_s0 }
   0xa   :  { %p164_p3 = por %p163_p2, %p162_p1 }
   0xb   :  { %146 = vmatpush3.bf16.msra.mxu0 %v156_v4 }
   0xc   :  { %p165_p4 = pnand %p164_p3, %p158_p0 }
   0xe   :  { %148 = vmatmul.mubr.msk.bf16.vlgmr.msra.gmra.mrb[0].mxu0 %vm53_vm0, %v21_v8 }
  0xe1   :  { %v149_v10 = vpop.f32.mrb[0].mxu0 }
  0xe2   :  { %v103_v11 = vadd.f32 %v149_v10, %v130_v9  ;;  %v94_v12 = vpop.f32.mrb[1].mxu0 }
  0xe3   :  { %v95_v13 = vadd.f32 %v130_v9, %v94_v12  ;;  %v150_v14 = vpop.f32.mrb[2].mxu0 }
  0xe4   :  { %112 = vst.msk [vmem:[#allocation2 + $0x10] sm:$0xff] %vm109_vm1, %v103_v11  ;;  %v106_v15 = vadd.f32 %v150_v14, %v130_v9  ;;  %v97_v16 = vpop.f32.mrb[3].mxu0 }
  0xe5   :  { %110 = vst.msk [vmem:[#allocation2] sm:$0xff] %vm109_vm1, %v95_v13  ;;  %v98_v17 = vadd.f32 %v130_v9, %v97_v16 }
  0xe6   :  { %113 = vst.msk [vmem:[#allocation2 + $0x18] sm:$0xff] %vm109_vm1, %v106_v15 }
  0xe7   :  { %111 = vst.msk [vmem:[#allocation2 + $0x8] sm:$0xff] %vm109_vm1, %v98_v17 }
  0xe8   :  { %168 = shalt.err (!%p165_p4)
}
  0xe9   :  { %s169_s30 = scalar_lea.hbm %s243_s3, 512 }
  0xea   :  { %p170_p5 = scmp.ne.s32.totalorder %s243_s3, %s169_s30  ;;  %p173_p6 = scmp.lt.u32.totalorder %s169_s30, %s243_s3 }
  0xec   :  { %p175_p7 = pnand %p173_p6, %p170_p5 }
  0xee   :  { %178 = shalt.err (!%p175_p7)
}
  0xef   :  { %s182_s8 = smov 128   ;;  %s183_s9 = smov 8  }
  0xf0   :  { %125 = dma.vmem_to_hbm [thread:$0]  %s120_s28, 512, %s243_s3, [#allocation3], %s182_s8, %s182_s8, %s183_s9  }
  0xf1   :  { %179 = dma.done.wait [#allocation3], 512  }
  0xf2   :  { %180 = vsyncadd [#allocation3], 4294966784 }
  0xf3   :  { %129 = vsyncpa [#allocation3], 1 }

</bundles_post_ra>
